<compile_context>
chip_gen: v6e
topology: v6e:2x2x1
jax: 0.10.0
libtpu: 0.0.40
codegen_flags: <defaults>
</compile_context>

<pallas_src>
import functools

import jax
import jax.numpy as jnp
from jax.experimental import pallas as pl
from jax.experimental.pallas import tpu as pltpu

INT8_LOWER = -128.0
INT8_UPPER = 127.0
QLEVELS = INT8_UPPER - INT8_LOWER            # 255
EPS = float(jnp.finfo(jnp.float32).eps)

_LANES = 128
_SUBLANES = 8


def _cdiv(a, b):
    return -(-a // b)


def _round_up(a, b):
    return _cdiv(a, b) * b


def _chip_budgets():
    """(tile_bytes, vmem_limit_bytes, fused_f32_slab_bytes) per TPU generation."""
    kind = ""
    try:
        kind = jax.devices()[0].device_kind.lower()
    except Exception:
        pass
    if ("v5" in kind) or ("v6" in kind):
        # 128 MiB physical VMEM: 8 MiB tiles, raise the scoped limit.
        return 8 << 20, 64 << 20, 8 << 20
    # v7x has only 64 MiB physical VMEM (32 MiB scoped default); unknown parts
    # also take the conservative setting.
    return 4 << 20, 32 << 20, 4 << 20


def _pack_2d(x, tile_bytes):
    """Flatten x to a lane-dense, tile-aligned (rows_p, cols) slab.

    Padding (if any) reuses x's first element so the min/max observer is
    unaffected; the padded tail is sliced off after quantization.  All shape
    math is static.  Returns (slab, n_valid, tile_rows).
    """
    flat = x.reshape(-1)
    n = flat.shape[0]

    cols = _LANES
    for c in (1024, 512, 256):
        if n >= c:
            cols = c
            break

    itemsize = jnp.dtype(x.dtype).itemsize
    row_align = _SUBLANES * max(1, 4 // itemsize)   # f32: 8, bf16: 16, int8: 32

    rows = _cdiv(n, cols)
    max_tile_rows = max(
        row_align, (tile_bytes // (cols * itemsize)) // row_align * row_align)
    num_tiles = _cdiv(rows, max_tile_rows)
    tile_rows = _round_up(_cdiv(rows, num_tiles), row_align)
    rows_p = tile_rows * num_tiles

    pad = rows_p * cols - n
    if pad:
        # TODO(synk): for large non-aligned tensors this pad (and the matching
        # post-slice) costs one extra HBM read+write; a masked ragged-tail tile
        # would remove it.  Aligned shapes (typical ViT activations) never pad.
        fill = jnp.broadcast_to(flat[0], (pad,)).astype(flat.dtype)
        flat = jnp.concatenate([flat, fill])
    return flat.reshape(rows_p, cols), n, tile_rows


def _fused_slab(x):
    """Pad-free lane-dense 2-D view of x, or None if the size is not 128-aligned."""
    n = 1
    for d in x.shape:
        n *= int(d)
    if n == 0 or n % _LANES != 0:
        return None
    cols = _LANES
    for c in (1024, 512, 256):
        if n % c == 0:
            cols = c
            break
    return x.reshape(n // cols, cols)


# ---------------------------------------------------------------------------
# Kernel 1: layer-wise min/max partials (observer.update hot path).
# Each grid step emits sublane-aligned (8, cols) f32 partials (row-axis reduce
# only, in native dtype); the tiny final reduction happens in the wrapper, so
# the grid axis is fully parallel.
# ---------------------------------------------------------------------------
def _minmax_kernel(x_ref, min_ref, max_ref):
    x = x_ref[...]                                   # native dtype; min/max are exact
    cols = x.shape[1]
    mn = jnp.min(x, axis=0, keepdims=True)
    mx = jnp.max(x, axis=0, keepdims=True)
    min_ref[...] = jnp.broadcast_to(mn, (_SUBLANES, cols)).astype(jnp.float32)
    max_ref[...] = jnp.broadcast_to(mx, (_SUBLANES, cols)).astype(jnp.float32)


def _layerwise_minmax(x2, tile_rows, vmem_limit):
    rows, cols = x2.shape
    num_tiles = rows // tile_rows
    part_min, part_max = pl.pallas_call(
        _minmax_kernel,
        out_shape=(
            jax.ShapeDtypeStruct((num_tiles * _SUBLANES, cols), jnp.float32),
            jax.ShapeDtypeStruct((num_tiles * _SUBLANES, cols), jnp.float32),
        ),
        grid_spec=pltpu.PrefetchScalarGridSpec(
            num_scalar_prefetch=0,
            grid=(num_tiles,),
            in_specs=[pl.BlockSpec((tile_rows, cols), lambda i: (i, 0))],
            out_specs=(
                pl.BlockSpec((_SUBLANES, cols), lambda i: (i, 0)),
                pl.BlockSpec((_SUBLANES, cols), lambda i: (i, 0)),
            ),
        ),
        compiler_params=pltpu.CompilerParams(
            dimension_semantics=("parallel",),
            vmem_limit_bytes=vmem_limit),
    )(x2)
    # Tiny cross-lane/cross-tile reduction (a few KB) outside the kernel.
    return jnp.min(part_min), jnp.max(part_max)


# ---------------------------------------------------------------------------
# Kernel 2: uniform fake quantization (quant -> dequant), elementwise.
# Scalars (scale, 1/scale, zero_point) travel through SMEM; the per-element
# divide is replaced by a multiply with the hoisted reciprocal.
# ---------------------------------------------------------------------------
def _fake_quant_kernel(qp_ref, x_ref, o_ref):
    scale = qp_ref[0]
    inv_scale = qp_ref[1]
    zp = qp_ref[2]
    x = x_ref[...].astype(jnp.float32)
    q = jnp.clip(jnp.round(x * inv_scale + zp), INT8_LOWER, INT8_UPPER)
    o_ref[...] = ((q - zp) * scale).astype(o_ref.dtype)


def _fake_quant(x2, tile_rows, scale, zero_point, vmem_limit):
    rows, cols = x2.shape
    num_tiles = rows // tile_rows
    inv_scale = 1.0 / scale
    qp = jnp.stack([scale, inv_scale, zero_point]).astype(jnp.float32)
    return pl.pallas_call(
        _fake_quant_kernel,
        out_shape=jax.ShapeDtypeStruct(x2.shape, x2.dtype),
        grid_spec=pltpu.PrefetchScalarGridSpec(
            num_scalar_prefetch=0,
            grid=(num_tiles,),
            in_specs=[
                pl.BlockSpec(memory_space=pltpu.MemorySpace.SMEM),
                pl.BlockSpec((tile_rows, cols), lambda i: (i, 0)),
            ],
            out_specs=pl.BlockSpec((tile_rows, cols), lambda i: (i, 0)),
        ),
        compiler_params=pltpu.CompilerParams(
            dimension_semantics=("parallel",),
            vmem_limit_bytes=vmem_limit),
    )(qp, x2)


# ---------------------------------------------------------------------------
# Kernel 3: fused calibrate + quant for VMEM-resident slabs.
# One HBM read: min/max, scale/zp, and fake-quant all from the resident copy.
# ---------------------------------------------------------------------------
def _fused_calibrate_quant_kernel(x_ref, o_ref):
    x = x_ref[...].astype(jnp.float32)
    mn = jnp.min(x)
    mx = jnp.max(x)
    scale = jnp.maximum((mx - mn) / jnp.float32(QLEVELS), EPS)
    zp = jnp.clip(INT8_LOWER - jnp.round(mn / scale), INT8_LOWER, INT8_UPPER)
    inv_scale = 1.0 / scale
    q = jnp.clip(jnp.round(x * inv_scale + zp), INT8_LOWER, INT8_UPPER)
    o_ref[...] = ((q - zp) * scale).astype(o_ref.dtype)


def _fused_calibrate_quant(x2, vmem_limit):
    # Whole slab as a single block (block == full array dims waives (8,128)).
    return pl.pallas_call(
        _fused_calibrate_quant_kernel,
        out_shape=jax.ShapeDtypeStruct(x2.shape, x2.dtype),
        compiler_params=pltpu.CompilerParams(vmem_limit_bytes=vmem_limit),
    )(x2)


# ---------------------------------------------------------------------------
# QAct forward wrapper (flags mirror the PyTorch module).
# ---------------------------------------------------------------------------
@functools.partial(jax.jit, static_argnames=("quant", "calibrate", "last_calibrate"))
def qact_forward(x, quant=True, calibrate=True, last_calibrate=True):
    orig_shape = x.shape
    orig_dtype = x.dtype
    tile_bytes, vmem_limit, fused_bytes = _chip_budgets()

    # Fused single-pass path for the calibrate+quant case on VMEM-resident,
    # lane-aligned activations: one HBM read instead of two, no pad/slice.
    if quant and calibrate and last_calibrate:
        slab = _fused_slab(x)
        if slab is not None and slab.size * 4 <= fused_bytes:
            out = _fused_calibrate_quant(slab, vmem_limit)
            return out.reshape(orig_shape).astype(orig_dtype)

    x2, n_valid, tile_rows = _pack_2d(x, tile_bytes)

    scale = jnp.float32(1.0)
    zero_point = jnp.float32(0.0)
    if calibrate:
        # observer.update(x)  (minmax, layer_wise)
        min_val, max_val = _layerwise_minmax(x2, tile_rows, vmem_limit)
        if last_calibrate:
            # quantizer.update_quantization_params (asymmetric int8) — scalar glue
            scale = jnp.maximum((max_val - min_val) / jnp.float32(QLEVELS), EPS)
            zero_point = jnp.clip(INT8_LOWER - jnp.round(min_val / scale),
                                  INT8_LOWER, INT8_UPPER)

    if not quant:
        return x

    # TODO(synk): no persistent observer/quantizer state across calls; with
    # calibrate=False and quant=True this uses scale=1, zp=0 instead of a
    # previously calibrated scale (the PyTorch module stores observer buffers).
    out2 = _fake_quant(x2, tile_rows, scale, zero_point, vmem_limit)
    out_flat = out2.reshape(-1)
    if out_flat.shape[0] != n_valid:
        out_flat = out_flat[:n_valid]
    return out_flat.reshape(orig_shape).astype(orig_dtype)


def _reference(x):
    # Mirrors the kernel's reciprocal-multiply form; differs from torch's
    # division only at exact rounding boundaries (<= 1 ulp of the pre-round value).
    xf = x.astype(jnp.float32)
    min_val = jnp.min(xf)
    max_val = jnp.max(xf)
    scale = jnp.maximum((max_val - min_val) / jnp.float32(QLEVELS), EPS)
    zp = jnp.clip(INT8_LOWER - jnp.round(min_val / scale), INT8_LOWER, INT8_UPPER)
    inv_scale = 1.0 / scale
    q = jnp.clip(jnp.round(xf * inv_scale + zp), INT8_LOWER, INT8_UPPER)
    return ((q - zp) * scale).astype(x.dtype)


if __name__ == "__main__":
    key = jax.random.PRNGKey(0)
    x = jax.random.normal(key, (2, 4, 16, 16), dtype=jnp.float32)  # NCHW activations

    # Aligned, VMEM-resident -> fused single-pass kernel.
    out = jax.block_until_ready(
        qact_forward(x, quant=True, calibrate=True, last_calibrate=True))
    ref = _reference(x)
    assert out.shape == x.shape and out.dtype == x.dtype
    assert jnp.allclose(out, ref, atol=1e-5, rtol=1e-5)

    # Non tile-aligned shape exercises the two-pass (minmax + fake-quant) path
    # including the padded-tail handling.
    x_odd = jax.random.normal(jax.random.PRNGKey(1), (2, 3, 7, 5), dtype=jnp.float32)
    out_odd = jax.block_until_ready(
        qact_forward(x_odd, quant=True, calibrate=True, last_calibrate=True))
    assert jnp.allclose(out_odd, _reference(x_odd), atol=1e-5, rtol=1e-5)

    # bf16 input through the fused path (byte-budgeted tiling / native-dtype reduce).
    x_bf16 = jax.random.normal(jax.random.PRNGKey(2), (2, 4, 16, 16), dtype=jnp.bfloat16)
    out_bf16 = jax.block_until_ready(
        qact_forward(x_bf16, quant=True, calibrate=True, last_calibrate=True))
    assert out_bf16.shape == x_bf16.shape and out_bf16.dtype == x_bf16.dtype
    assert jnp.allclose(out_bf16.astype(jnp.float32),
                        _reference(x_bf16).astype(jnp.float32),
                        atol=5e-2, rtol=0)

    # Identity path (quant=False) just returns x, as in the PyTorch module.
    ident = jax.block_until_ready(qact_forward(x, quant=False, calibrate=False))
    assert jnp.array_equal(ident, x)

    print("KERNEL_OK")
</pallas_src>

<mosaic_0001>
module attributes {stable_mosaic.version = 11 : i64} {
  func.func @_fused_calibrate_quant_kernel(%arg0: memref<2x1024xf32, #tpu.memory_space<vmem>>, %arg1: memref<2x1024xf32, #tpu.memory_space<vmem>>) attributes {dimension_semantics = [], scalar_prefetch = 0 : i64, scratch_operands = 0 : i64, tpu.core_type = #tpu.core_type<tc>} {
    %c0 = arith.constant 0 : index
    %c0_0 = arith.constant 0 : index
    %0 = vector.load %arg0[%c0, %c0_0] : memref<2x1024xf32, #tpu.memory_space<vmem>>, vector<2x1024xf32>
    %1 = vector.shape_cast %0 : vector<2x1024xf32> to vector<1x2x1024xf32>
    %cst = arith.constant dense<0x7F800000> : vector<1xf32>
    %2 = vector.multi_reduction <minimumf>, %1, %cst [1, 2] : vector<1x2x1024xf32> to vector<1xf32>
    %3 = vector.shape_cast %2 : vector<1xf32> to vector<1x1x1xf32>
    %4 = vector.extract %3[0, 0, 0] : f32 from vector<1x1x1xf32>
    %5 = vector.shape_cast %0 : vector<2x1024xf32> to vector<1x2x1024xf32>
    %cst_1 = arith.constant dense<0xFF800000> : vector<1xf32>
    %6 = vector.multi_reduction <maximumf>, %5, %cst_1 [1, 2] : vector<1x2x1024xf32> to vector<1xf32>
    %7 = vector.shape_cast %6 : vector<1xf32> to vector<1x1x1xf32>
    %8 = vector.extract %7[0, 0, 0] : f32 from vector<1x1x1xf32>
    %9 = arith.subf %8, %4 : f32
    %cst_2 = arith.constant 2.550000e+02 : f32
    %10 = arith.divf %9, %cst_2 : f32
    %cst_3 = arith.constant 1.1920929E-7 : f32
    %11 = arith.maximumf %10, %cst_3 : f32
    %12 = arith.divf %4, %11 : f32
    %13 = math.roundeven %12 : f32
    %cst_4 = arith.constant -1.280000e+02 : f32
    %14 = arith.subf %cst_4, %13 : f32
    %cst_5 = arith.constant -1.280000e+02 : f32
    %cst_6 = arith.constant 1.270000e+02 : f32
    %15 = arith.maximumf %cst_5, %14 : f32
    %16 = arith.minimumf %cst_6, %15 : f32
    %cst_7 = arith.constant 1.000000e+00 : f32
    %17 = arith.divf %cst_7, %11 : f32
    %18 = vector.broadcast %17 : f32 to vector<2x1024xf32>
    %19 = arith.mulf %0, %18 : vector<2x1024xf32>
    %20 = vector.broadcast %16 : f32 to vector<2x1024xf32>
    %21 = arith.addf %19, %20 : vector<2x1024xf32>
    %22 = math.roundeven %21 : vector<2x1024xf32>
    %cst_8 = arith.constant -1.280000e+02 : f32
    %cst_9 = arith.constant 1.270000e+02 : f32
    %23 = vector.broadcast %cst_8 : f32 to vector<2x1024xf32>
    %24 = arith.maximumf %23, %22 : vector<2x1024xf32>
    %25 = vector.broadcast %cst_9 : f32 to vector<2x1024xf32>
    %26 = arith.minimumf %25, %24 : vector<2x1024xf32>
    %27 = vector.broadcast %16 : f32 to vector<2x1024xf32>
    %28 = arith.subf %26, %27 : vector<2x1024xf32>
    %29 = vector.broadcast %11 : f32 to vector<2x1024xf32>
    %30 = arith.mulf %28, %29 : vector<2x1024xf32>
    %c0_10 = arith.constant 0 : index
    %c0_11 = arith.constant 0 : index
    %31 = vector.load %arg1[%c0_10, %c0_11] : memref<2x1024xf32, #tpu.memory_space<vmem>>, vector<2x1024xf32>
    tpu.vector_store %arg1[%c0_10, %c0_11], %30 {strides = array<i32>} : memref<2x1024xf32, #tpu.memory_space<vmem>>, vector<2x1024xf32>,
    return
  }
}

</mosaic_0001>

<bundles_post_ra>
// kernel: qact_forward.1
= control target key start
LH: loop header
LB: loop body
LE: loop exit
PB: predicated region body
PF: predicated region fallthrough
CT: control target
= control target key end

     0   :  { %v16_v0 = vlaneseq  ;;  %v179_v3 = vmov 1983009808   ;;  %vm54_vm0 = vcmask 1041408   ;;  %s180_s13 = smov 1.1920929e-07   ;;  %s181_s24 = smov -128.0   ;;  %s233_s0 = inlined_call_operand.vmem [shape: f32[2,1024], index: 0, kind: input, shape index: {}]   ;;  %s234_s1 = inlined_call_operand.vmem [shape: f32[2,1024], index: 1, kind: output, shape index: {}]  }
   0x1   :  { %v196_v1 = vld [vmem:[%s233_s0] sm:$0xff]  ;;  %v201_v2 = vld [vmem:[%s233_s0 + $0x8] sm:$0xff]  ;;  %v14_v4 = vunpack.c.l.s4 %v179_v3  ;;  %s182_s26 = smov 127.0  }
   0x2   :  { %v17_v5 = vshrl.u32 %v16_v0, 7  ;;  %v12_v6 = vcombine.high %v196_v1, %v196_v1  ;;  %v29_v8 = vcombine.high %v201_v2, %v201_v2 }
   0x3   :  { %v15_v7 = vunpack.c.0.s8 %v14_v4 }
   0x5   :  { %v18_v9 = vsub.s32 %v15_v7, %v17_v5 }
   0x7   :  { %v19_v10 = vrot.slane %v196_v1, %v18_v9  ;;  %v26_v11 = vrot.slane %v12_v6, %v18_v9  ;;  %v36_v12 = vrot.slane %v201_v2, %v18_v9  ;;  %v43_v13 = vrot.slane %v29_v8, %v18_v9 }
   0x9   :  { %v27_v14 = vcombine.high %v19_v10, %v19_v10  ;;  %v28_v15 = vcombine.high %v26_v11, %v26_v11  ;;  %v44_v16 = vcombine.high %v36_v12, %v36_v12  ;;  %v45_v17 = vcombine.high %v43_v13, %v43_v13 }
   0xa   :  { %v55_v18 = vsel %vm54_vm0, %v19_v10, inf  ;;  %v57_v19 = vsel %vm54_vm0, %v26_v11, inf  ;;  %v59_v20 = vsel %vm54_vm0, %v36_v12, inf  ;;  %v63_v21 = vsel %vm54_vm0, %v43_v13, inf }
   0xb   :  { %v56_v22 = vsel %vm54_vm0, %v27_v14, inf  ;;  %v58_v23 = vsel %vm54_vm0, %v28_v15, inf  ;;  %v60_v24 = vmin.f32 %v55_v18, %v59_v20  ;;  %v61_v25 = vsel %vm54_vm0, %v44_v16, inf }
   0xc   :  { %v62_v26 = vmin.f32 %v56_v22, %v61_v25  ;;  %v64_v27 = vmin.f32 %v57_v19, %v63_v21  ;;  %v65_v28 = vsel %vm54_vm0, %v45_v17, inf  ;;  %v79_v29 = vsel %vm54_vm0, %v19_v10, -inf }
   0xd   :  { %v66_v30 = vmin.f32 %v58_v23, %v65_v28  ;;  %v80_v31 = vsel %vm54_vm0, %v27_v14, -inf  ;;  %v81_v32 = vsel %vm54_vm0, %v26_v11, -inf  ;;  %v82_v33 = vsel %vm54_vm0, %v28_v15, -inf }
   0xe   :  { %v67_v34 = vmin.f32 %v60_v24, %v62_v26  ;;  %v83_v35 = vsel %vm54_vm0, %v36_v12, -inf  ;;  %v85_v36 = vsel %vm54_vm0, %v44_v16, -inf  ;;  %v87_v37 = vsel %vm54_vm0, %v43_v13, -inf }
   0xf   :  { %v68_v38 = vmin.f32 %v64_v27, %v66_v30  ;;  %v84_v39 = vmax.f32 %v79_v29, %v83_v35  ;;  %v86_v40 = vmax.f32 %v80_v31, %v85_v36  ;;  %v88_v41 = vmax.f32 %v81_v32, %v87_v37 }
  0x10   :  { %v89_v42 = vsel %vm54_vm0, %v45_v17, -inf }
  0x11   :  { %v69_v43 = vmin.f32 %v67_v34, %v68_v38  ;;  %v90_v44 = vmax.f32 %v82_v33, %v89_v42  ;;  %v91_v45 = vmax.f32 %v84_v39, %v86_v40 }
  0x13   :  { %70 = vmin.xlane.f32.xlu0 %v69_v43  ;;  %v92_v46 = vmax.f32 %v88_v41, %v90_v44 }
  0x15   :  { %v93_v47 = vmax.f32 %v91_v45, %v92_v46 }
  0x17   :  { %94 = vmax.xlane.f32.xlu0 %v93_v47 }
  0x9c   :  { %v71_v48 = vpop.xlane.xlu0 %70 }
  0x9d   :  { %v72_v49 = vrot.slane %v71_v48, 4 }
  0x9f   :  { %v73_v50 = vmin.f32 %v71_v48, %v72_v49 }
  0xa0   :  { %v95_v51 = vpop.xlane.xlu0 %94 }
  0xa1   :  { %v74_v52 = vrot.slane %v73_v50, 2  ;;  %v96_v53 = vrot.slane %v95_v51, 4 }
  0xa3   :  { %v97_v54 = vmax.f32 %v95_v51, %v96_v53  ;;  %v75_v55 = vmin.f32 %v73_v50, %v74_v52 }
  0xa5   :  { %v98_v56 = vrot.slane %v97_v54, 2  ;;  %v76_v57 = vrot.slane %v75_v55, 1 }
  0xa7   :  { %v99_v58 = vmax.f32 %v97_v54, %v98_v56  ;;  %v77_v59 = vmin.f32 %v75_v55, %v76_v57 }
  0xa9   :  { %149 = vpush %v77_v59  ;;  %v100_v60 = vrot.slane %v99_v58, 1 }
  0xab   :  { %v101_v61 = vmax.f32 %v99_v58, %v100_v60 }
  0xad   :  { %151 = vpush %v101_v61 }
  0xda   :  { %s150_s0 = spop %149 }
  0xde   :  { %s152_s10 = spop %151 }
  0xdf   :  { %s103_s11 = ssub.f32 %s152_s10, %s150_s0 }
  0xe1   :  { %s106_s12 = smul.f32 0.003921569, %s103_s11 }
  0xe3   :  { %s107_s14 = smax.f32 %s180_s13, %s106_s12 }
  0xe4   :  { %v108_v62 = vstv %s107_s14 }
  0xe5   :  { %177 = vrcp.f32 %v108_v62 }
  0xf2   :  { %v178_v63 = vpop.eup %177 }
  0xf3   :  { %153 = vpush %v178_v63 }
 0x124   :  { %s154_s15 = spop %153 }
 0x125   :  { %s111_s16 = smul.f32 %s154_s15, %s150_s0  ;;  %v126_v0 = vstv %s154_s15 }
 0x126   :  { %v127_v3 = vmul.f32 %v126_v0, %v196_v1  ;;  %v128_v4 = vmul.f32 %v126_v0, %v201_v2 }
 0x127   :  { %s112_s17 = scvt.f32.s32 %s111_s16  ;;  %s117_s18 = sand.u32 2147483647, %s111_s16 }
 0x128   :  { %s115_s20 = sand.u32 2147483648, %s111_s16  ;;  %p118_p0 = scmp.lt.f32.partialorder %s117_s18, 2.1474836e+09 }
 0x129   :  { %s113_s19 = scvt.s32.f32 %s112_s17 }
 0x12b   :  { %s114_s21 = sand.u32 2147483647, %s113_s19 }
 0x12c   :  { %s116_s22 = sor.u32 %s115_s20, %s114_s21 }
 0x12d   :  { %s236_s22 = smov (!%p118_p0, %s116_s22), %s111_s16 }
 0x12e   :  { %s120_s23 = ssub.f32 -128.0, %s236_s22 }
 0x130   :  { %s121_s25 = smax.f32 %s181_s24, %s120_s23 }
 0x131   :  { %s122_s27 = smin.f32 %s182_s26, %s121_s25 }
 0x132   :  { %v129_v5 = vstv %s122_s27 }
 0x133   :  { %v130_v6 = vadd.f32 %v129_v5, %v127_v3  ;;  %v131_v7 = vadd.f32 %v129_v5, %v128_v4 }
 0x135   :  { %v157_v8 = vcvt.f32.s32 %v130_v6  ;;  %v165_v9 = vcvt.f32.s32 %v131_v7  ;;  %v155_v11 = vand.u32 2147483647, %v130_v6  ;;  %v160_v14 = vand.u32 2147483648, %v130_v6 }
 0x136   :  { %v163_v15 = vand.u32 2147483647, %v131_v7  ;;  %v168_v17 = vand.u32 2147483648, %v131_v7 }
 0x137   :  { %v158_v10 = vcvt.s32.f32 %v157_v8  ;;  %v166_v12 = vcvt.s32.f32 %v165_v9  ;;  %vm156_vm1 = vcmp.lt.f32.partialorder %v155_v11, 8388608.0 }
 0x138   :  { %vm164_vm2 = vcmp.lt.f32.partialorder %v163_v15, 8388608.0 }
 0x139   :  { %v159_v13 = vand.u32 2147483647, %v158_v10  ;;  %v167_v16 = vand.u32 2147483647, %v166_v12 }
 0x13b   :  { %v161_v18 = vor.u32 %v160_v14, %v159_v13  ;;  %v169_v19 = vor.u32 %v168_v17, %v167_v16 }
 0x13d   :  { %v162_v20 = vsel %vm156_vm1, %v161_v18, %v130_v6  ;;  %v170_v1 = vsel %vm164_vm2, %v169_v19, %v131_v7 }
 0x13e   :  { %v134_v2 = vmax.f32 %v162_v20, -128.0  ;;  %v135_v21 = vmax.f32 %v170_v1, -128.0 }
 0x140   :  { %v136_v22 = vmin.f32 %v134_v2, 127.0  ;;  %v137_v23 = vmin.f32 %v135_v21, 127.0 }
 0x142   :  { %v138_v24 = vsub.f32 %v136_v22, %v129_v5  ;;  %v139_v25 = vsub.f32 %v137_v23, %v129_v5 }
 0x144   :  { %v141_v26 = vmul.f32 %v138_v24, %v108_v62  ;;  %v142_v27 = vmul.f32 %v139_v25, %v108_v62 }
 0x146   :  { %143 = vst [vmem:[%s234_s1] sm:$0xff] %v141_v26  ;;  %144 = vst [vmem:[%s234_s1 + $0x8] sm:$0xff] %v142_v27 }

</bundles_post_ra>
